<compile_context>
chip_gen: v6e
topology: v6e:2x2x1
jax: 0.10.0
libtpu: 0.0.40
codegen_flags: <defaults>
</compile_context>

<pallas_src>
import functools

import jax
import jax.numpy as jnp
from jax import lax
from jax.experimental import pallas as pl
from jax.experimental.pallas import tpu as pltpu


# ----------------------------- helpers (traced inside kernels) --------------

def _layernorm_f32(x, g, b, eps):
    x = x.astype(jnp.float32)
    mu = jnp.mean(x, axis=-1, keepdims=True)
    xc = x - mu
    var = jnp.mean(xc * xc, axis=-1, keepdims=True)
    return (xc * lax.rsqrt(var + eps)) * g + b


def _quick_gelu(x):
    # CLIP uses quick_gelu: x * sigmoid(1.702 x)
    return x * jax.nn.sigmoid(1.702 * x)


def _choose_batch_tile(B, S, target_rows=512):
    """Pick Bt so Bt*S ~ target MXU rows, but keep >=2 parallel grid steps."""
    bt = max(1, min(B, target_rows // max(S, 1)))
    # v7x has 2 TensorCores: keep at least 2 steps on the parallel axis.
    while bt > 1 and B // bt < 2:
        bt //= 2
    while B % bt:
        bt -= 1
    return bt


# ----------------------------- fused transformer tower ----------------------

def _tower_kernel(h_ref, pad_ref,
                  ln1g_ref, ln1b_ref, qkvw_ref, qkvb_ref,
                  ow_ref, ob_ref, ln2g_ref, ln2b_ref,
                  fc1w_ref, fc1b_ref, fc2w_ref, fc2b_ref,
                  o_ref, acc_ref, *, num_heads, head_dim, causal, eps):
    """One CLIPEncoderLayer for a (Bt, S, H) batch tile; layer = grid axis 1."""
    l = pl.program_id(1)
    Bt, S, H = acc_ref.shape
    scale = head_dim ** -0.5

    # Load the batch tile into the f32 VMEM carry at the first layer only;
    # acc_ref stays resident across the (arbitrary) layer axis.
    @pl.when(l == 0)
    def _():
        acc_ref[...] = h_ref[...].astype(jnp.float32)

    res = acc_ref[...]                                   # (Bt, S, H) f32
    rows = res.reshape(Bt * S, H)                        # fill MXU rows

    # ---- pre-LN + fused QKV projection (one MXU pass, N = 3H lanes) ----
    x = _layernorm_f32(rows, ln1g_ref[0], ln1b_ref[0], eps)
    qkv = jnp.dot(x.astype(jnp.bfloat16), qkvw_ref[0],
                  preferred_element_type=jnp.float32) + qkvb_ref[0]  # (Bt*S,3H)

    def to_heads(t):
        t = t.reshape(Bt, S, num_heads, head_dim)
        return t.transpose(0, 2, 1, 3).reshape(Bt * num_heads, S, head_dim
                                               ).astype(jnp.bfloat16)

    q = to_heads(qkv[:, :H] * scale)                     # (Bt*nH, S, d)
    k = to_heads(qkv[:, H:2 * H])
    v = to_heads(qkv[:, 2 * H:])

    # single-batch-dim batched matmuls (guaranteed Mosaic dot_general lowering)
    scores = jnp.einsum('zsd,ztd->zst', q, k,
                        preferred_element_type=jnp.float32)  # (Bt*nH, S, S)

    if causal:
        # causal mask from iota + tiny (Bt, 1, S) key-validity mask; no
        # (B, S, S) f32 mask is ever DMA'd.
        row = lax.broadcasted_iota(jnp.int32, (S, S), 0)
        col = lax.broadcasted_iota(jnp.int32, (S, S), 1)
        causal_ok = (col <= row)[None, None]                     # (1,1,S,S)
        key_ok = (pad_ref[...] > 0.5).reshape(Bt, 1, 1, S)       # (Bt,1,1,S)
        allowed = causal_ok & key_ok                             # (Bt,1,S,S)
        scores = jnp.where(allowed,
                           scores.reshape(Bt, num_heads, S, S),
                           -1e9).reshape(Bt * num_heads, S, S)

    scores = scores - jnp.max(scores, axis=-1, keepdims=True)
    p = jnp.exp(scores)
    p = p * pl.reciprocal(jnp.sum(p, axis=-1, keepdims=True), approx=True)

    ctx = jnp.einsum('zst,ztd->zsd', p.astype(jnp.bfloat16), v,
                     preferred_element_type=jnp.float32)     # (Bt*nH, S, d)
    ctx = ctx.reshape(Bt, num_heads, S, head_dim).transpose(0, 2, 1, 3)
    ctx = ctx.reshape(Bt * S, H)

    attn_out = jnp.dot(ctx.astype(jnp.bfloat16), ow_ref[0],
                       preferred_element_type=jnp.float32) + ob_ref[0]
    h = attn_out + rows

    # ---- pre-LN + MLP (quick_gelu) + residual ----
    y = _layernorm_f32(h, ln2g_ref[0], ln2b_ref[0], eps)
    y = jnp.dot(y.astype(jnp.bfloat16), fc1w_ref[0],
                preferred_element_type=jnp.float32) + fc1b_ref[0]
    y = _quick_gelu(y)
    y = jnp.dot(y.astype(jnp.bfloat16), fc2w_ref[0],
                preferred_element_type=jnp.float32) + fc2b_ref[0]

    acc_ref[...] = (y + h).reshape(Bt, S, H)

    @pl.when(l == pl.num_programs(1) - 1)
    def _():
        o_ref[...] = acc_ref[...].astype(o_ref.dtype)


def encoder_tower(h, pad, lw, *, num_heads, causal, eps=1e-5):
    """Run all L encoder layers in one pallas_call.

    h:   (B, S, H) bf16 activations
    pad: (B, 1, S) f32 key-validity (1 = keep); only used when causal=True
    lw:  dict of stacked per-layer weights, leading dim L
    """
    B, S, H = h.shape
    L = lw["qkv_w"].shape[0]
    head_dim = H // num_heads
    Bt = _choose_batch_tile(B, S)
    nbt = B // Bt

    names = ["ln1_g", "ln1_b", "qkv_w", "qkv_b", "o_w", "o_b",
             "ln2_g", "ln2_b", "fc1_w", "fc1_b", "fc2_w", "fc2_b"]
    weights = [lw[n] for n in names]

    def wspec(a):
        # one layer slice per step; layer axis is innermost so layer l+1
        # weights are prefetched (double-buffered) under layer l compute.
        return pl.BlockSpec((1,) + a.shape[1:],
                            lambda bt, l: (l,) + (0,) * (a.ndim - 1))

    return pl.pallas_call(
        functools.partial(_tower_kernel, num_heads=num_heads,
                          head_dim=head_dim, causal=causal, eps=eps),
        grid=(nbt, L),
        in_specs=[pl.BlockSpec((Bt, S, H), lambda bt, l: (bt, 0, 0)),
                  pl.BlockSpec((Bt, 1, S), lambda bt, l: (bt, 0, 0))]
                 + [wspec(w) for w in weights],
        out_specs=pl.BlockSpec((Bt, S, H), lambda bt, l: (bt, 0, 0)),
        out_shape=jax.ShapeDtypeStruct((B, S, H), h.dtype),
        scratch_shapes=[pltpu.VMEM((Bt, S, H), jnp.float32)],
        compiler_params=pltpu.CompilerParams(
            dimension_semantics=("parallel", "arbitrary"),
            vmem_limit_bytes=64 * 1024 * 1024),
    )(h, pad, *weights)


# ----------------------------- row-tiled standalone kernels -----------------

_ROW_TILE = 512  # ~85% of HBM roofline for mem-bound row-wise ops


def _row_tile(M):
    return M if M <= _ROW_TILE else _ROW_TILE


def _linear_kernel(x_ref, w_ref, o_ref):
    o_ref[...] = jnp.dot(x_ref[...], w_ref[...],
                         preferred_element_type=jnp.float32).astype(o_ref.dtype)


def pallas_linear(x, w, out_dtype=jnp.float32):
    """y = x @ w (no bias), row-tiled over a grid."""
    M, K = x.shape
    N = w.shape[1]
    tr = _row_tile(M)
    return pl.pallas_call(
        _linear_kernel,
        grid=(pl.cdiv(M, tr),),
        in_specs=[pl.BlockSpec((tr, K), lambda i: (i, 0)),
                  pl.BlockSpec((K, N), lambda i: (0, 0))],
        out_specs=pl.BlockSpec((tr, N), lambda i: (i, 0)),
        out_shape=jax.ShapeDtypeStruct((M, N), out_dtype),
        compiler_params=pltpu.CompilerParams(
            dimension_semantics=("parallel",)),
    )(x, w)


def _layernorm_kernel(x_ref, g_ref, b_ref, o_ref, *, eps):
    o_ref[...] = _layernorm_f32(x_ref[...], g_ref[...], b_ref[...],
                                eps).astype(o_ref.dtype)


def pallas_layernorm(x, g, b, eps=1e-5, out_dtype=None):
    M, H = x.shape
    out_dtype = out_dtype or x.dtype
    tr = _row_tile(M)
    return pl.pallas_call(
        functools.partial(_layernorm_kernel, eps=eps),
        grid=(pl.cdiv(M, tr),),
        in_specs=[pl.BlockSpec((tr, H), lambda i: (i, 0)),
                  pl.BlockSpec((1, H), lambda i: (0, 0)),
                  pl.BlockSpec((1, H), lambda i: (0, 0))],
        out_specs=pl.BlockSpec((tr, H), lambda i: (i, 0)),
        out_shape=jax.ShapeDtypeStruct((M, H), out_dtype),
        compiler_params=pltpu.CompilerParams(
            dimension_semantics=("parallel",)),
    )(x, g, b)


def _ln_project_kernel(x_ref, g_ref, b_ref, w_ref, o_ref, *, eps):
    y = _layernorm_f32(x_ref[...], g_ref[...], b_ref[...], eps)
    o_ref[...] = jnp.dot(y.astype(jnp.bfloat16), w_ref[...],
                         preferred_element_type=jnp.float32).astype(o_ref.dtype)


def pallas_ln_project(x, g, b, w, eps=1e-5):
    """Fused final-LayerNorm + bias-free projection (CLIP pooled-output path)."""
    M, H = x.shape
    N = w.shape[1]
    tr = _row_tile(M)
    return pl.pallas_call(
        functools.partial(_ln_project_kernel, eps=eps),
        grid=(pl.cdiv(M, tr),),
        in_specs=[pl.BlockSpec((tr, H), lambda i: (i, 0)),
                  pl.BlockSpec((1, H), lambda i: (0, 0)),
                  pl.BlockSpec((1, H), lambda i: (0, 0)),
                  pl.BlockSpec((H, N), lambda i: (0, 0))],
        out_specs=pl.BlockSpec((tr, N), lambda i: (i, 0)),
        out_shape=jax.ShapeDtypeStruct((M, N), jnp.float32),
        compiler_params=pltpu.CompilerParams(
            dimension_semantics=("parallel",)),
    )(x, g, b, w)


# ------------------------ CLIP model (glue in JAX) --------------------------

def vision_model(pixel_values, vp, cfg):
    """HF CLIPVisionTransformer -> class-token hidden (before post-LN)."""
    B, C, Hi, Wi = pixel_values.shape
    P, Hd = cfg["patch"], cfg["hidden"]
    nP = (Hi // P) * (Wi // P)

    # patchify (glue): NCHW -> (B*nP, C*P*P), matching torch conv-weight flatten
    patches = pixel_values.reshape(B, C, Hi // P, P, Wi // P, P)
    patches = patches.transpose(0, 2, 4, 1, 3, 5).reshape(B * nP, C * P * P)
    patch_embeds = pallas_linear(patches.astype(jnp.bfloat16), vp["patch_w"],
                                 out_dtype=jnp.float32).reshape(B, nP, Hd)

    cls = jnp.broadcast_to(vp["class_emb"][None, None, :], (B, 1, Hd))
    h = jnp.concatenate([cls, patch_embeds], axis=1) + vp["pos_emb"][None]
    S = nP + 1

    h = pallas_layernorm(h.reshape(-1, Hd), vp["pre_ln_g"], vp["pre_ln_b"],
                         out_dtype=jnp.bfloat16).reshape(B, S, Hd)

    pad = jnp.ones((B, 1, S), jnp.float32)           # vision: no masking at all
    h = encoder_tower(h, pad, vp["layers"], num_heads=cfg["heads"],
                      causal=False)
    return h[:, 0, :]                                # class token, pre post-LN


def text_model(input_ids, attention_mask, tp, cfg):
    """HF CLIPTextTransformer -> pooled hidden (before final-LN)."""
    B, S = input_ids.shape
    h = (jnp.take(tp["tok_emb"], input_ids, axis=0)
         + tp["pos_emb"][:S][None]).astype(jnp.bfloat16)

    pad = attention_mask.astype(jnp.float32).reshape(B, 1, S)
    h = encoder_tower(h, pad, tp["layers"], num_heads=cfg["heads"],
                      causal=True)

    # TODO(synk): HF's newer convention pools at the actual eos_token_id
    # position; we keep the original argmax(input_ids) behaviour of the module.
    eos_idx = jnp.argmax(input_ids, axis=-1)
    pooled = h[jnp.arange(B), eos_idx]               # (B, H), pre final-LN
    return pooled


def clip_forward(features, params, cfg):
    """Mirrors CLIPModel.forward: image/text towers, projections, interleave."""
    image_embeds = None
    text_embeds = None
    if "pixel_values" in features:
        pooled = vision_model(features["pixel_values"], params["vision"], cfg)
        # fused post-LN + visual_projection (LN is per-row, so pooling first
        # is equivalent to HF's LN-then-pool)
        image_embeds = pallas_ln_project(pooled,
                                         params["vision"]["post_ln_g"],
                                         params["vision"]["post_ln_b"],
                                         params["visual_projection"])
    if "input_ids" in features:
        pooled = text_model(features["input_ids"],
                            features.get("attention_mask",
                                         jnp.ones_like(features["input_ids"])),
                            params["text"], cfg)
        text_embeds = pallas_ln_project(pooled,
                                        params["text"]["final_ln_g"],
                                        params["text"]["final_ln_b"],
                                        params["text_projection"])

    sentence_embedding = []
    ii = ti = 0
    for input_type in features["image_text_info"]:
        if input_type == 0:
            sentence_embedding.append(image_embeds[ii]); ii += 1
        else:
            sentence_embedding.append(text_embeds[ti]); ti += 1
    features["embedding"] = jnp.stack(sentence_embedding).astype(jnp.float32)
    return features


# --------------------------- parameter init --------------------------------

def init_params(key, cfg):
    H, I, L = cfg["hidden"], cfg["mlp"], cfg["layers"]
    keys = iter(jax.random.split(key, 64))

    def nrm(shape, dtype=jnp.bfloat16):
        # matmul weights live in bf16 (f32 accumulation inside kernels)
        return (jax.random.normal(next(keys), shape, jnp.float32) * 0.02
                ).astype(dtype)

    def ones(shape):
        return jnp.ones(shape, jnp.float32)

    def zeros(shape):
        return jnp.zeros(shape, jnp.float32)

    def tower_weights():
        # all per-layer weights stacked along a leading L axis
        return dict(
            ln1_g=ones((L, 1, H)), ln1_b=zeros((L, 1, H)),
            qkv_w=nrm((L, H, 3 * H)), qkv_b=zeros((L, 1, 3 * H)),  # fused QKV
            o_w=nrm((L, H, H)), o_b=zeros((L, 1, H)),
            ln2_g=ones((L, 1, H)), ln2_b=zeros((L, 1, H)),
            fc1_w=nrm((L, H, I)), fc1_b=zeros((L, 1, I)),
            fc2_w=nrm((L, I, H)), fc2_b=zeros((L, 1, H)),
        )

    P, C = cfg["patch"], cfg["channels"]
    nP = (cfg["image_size"] // P) ** 2
    vision = dict(
        patch_w=nrm((C * P * P, H)),        # flattened conv weight (bias=False)
        class_emb=nrm((H,), jnp.float32),
        pos_emb=nrm((nP + 1, H), jnp.float32),
        pre_ln_g=ones((1, H)), pre_ln_b=zeros((1, H)),
        layers=tower_weights(),
        post_ln_g=ones((1, H)), post_ln_b=zeros((1, H)),
    )
    text = dict(
        tok_emb=nrm((cfg["vocab"], H), jnp.float32),
        pos_emb=nrm((cfg["max_pos"], H), jnp.float32),
        layers=tower_weights(),
        final_ln_g=ones((1, H)), final_ln_b=zeros((1, H)),
    )
    return dict(
        vision=vision,
        text=text,
        visual_projection=nrm((H, cfg["proj_dim"])),
        text_projection=nrm((H, cfg["proj_dim"])),
    )


# --------------------------------- main -------------------------------------

if __name__ == "__main__":
    # TODO(synk): pretrained-checkpoint loading and the HF tokenizer/processor
    # (CLIPModel.tokenize) are out of scope; parameters are synthetic.
    cfg = dict(hidden=32, heads=4, layers=2, mlp=64,
               image_size=16, patch=8, channels=3,
               vocab=64, max_pos=8, proj_dim=16)

    key = jax.random.PRNGKey(0)
    pkey, ikey, tkey = jax.random.split(key, 3)
    params = init_params(pkey, cfg)

    pixel_values = jax.random.normal(ikey, (2, 3, 16, 16), jnp.float32)  # NCHW
    input_ids = jax.random.randint(tkey, (2, 8), 0, cfg["vocab"], jnp.int32)
    attention_mask = jnp.ones((2, 8), jnp.int32)

    features = dict(
        pixel_values=pixel_values,
        input_ids=input_ids,
        attention_mask=attention_mask,
        image_text_info=[0, 1, 0, 1],   # interleave image/text embeddings
    )

    out = clip_forward(features, params, cfg)
    emb = jax.block_until_ready(out["embedding"])
    assert emb.shape == (4, cfg["proj_dim"]) and emb.dtype == jnp.float32
    print("KERNEL_OK")
</pallas_src>

<mosaic_0001>
module attributes {stable_mosaic.version = 11 : i64} {
  func.func @_linear_kernel(%arg0: i32, %arg1: memref<8x192xbf16, #tpu.memory_space<vmem>>, %arg2: memref<192x32xbf16, #tpu.memory_space<vmem>>, %arg3: memref<8x32xf32, #tpu.memory_space<vmem>>) attributes {dimension_semantics = [#tpu.dimension_semantics<parallel>], iteration_bounds = array<i64: 1>, scalar_prefetch = 0 : i64, scratch_operands = 0 : i64, tpu.core_type = #tpu.core_type<tc>, window_params = [{transform_indices = @transform_0, window_bounds = array<i64: 8, 192>}, {pipeline_mode = #tpu.pipeline_mode<synchronous>, transform_indices = @transform_1, window_bounds = array<i64: 192, 32>}, {transform_indices = @transform_2, window_bounds = array<i64: 8, 32>}]} {
    %c0 = arith.constant 0 : index
    %c0_0 = arith.constant 0 : index
    %0 = vector.load %arg1[%c0, %c0_0] : memref<8x192xbf16, #tpu.memory_space<vmem>>, vector<8x192xbf16>
    %c0_1 = arith.constant 0 : index
    %c0_2 = arith.constant 0 : index
    %1 = vector.load %arg2[%c0_1, %c0_2] : memref<192x32xbf16, #tpu.memory_space<vmem>>, vector<192x32xbf16>
    %cst = arith.constant dense<0.000000e+00> : vector<8x32xf32>
    %2 = tpu.matmul %0, %1, %cst {dimension_numbers = #tpu.dot_dimension_numbers<[1], [0], [0], [1], [0, 0, 1, 1], [], []>} : vector<8x192xbf16>, vector<192x32xbf16>, vector<8x32xf32> -> vector<8x32xf32>
    %c0_3 = arith.constant 0 : index
    %c0_4 = arith.constant 0 : index
    %3 = vector.load %arg3[%c0_3, %c0_4] : memref<8x32xf32, #tpu.memory_space<vmem>>, vector<8x32xf32>
    tpu.vector_store %arg3[%c0_3, %c0_4], %2 {strides = array<i32>} : memref<8x32xf32, #tpu.memory_space<vmem>>, vector<8x32xf32>,
    return
  }
  func.func @transform_0(%arg0: i32) -> (i32, i32) {
    %c0_i32 = arith.constant 0 : i32
    %c0_i32_0 = arith.constant 0 : i32
    return %arg0, %c0_i32 : i32, i32
  }
  func.func @transform_1(%arg0: i32) -> (i32, i32) {
    %c0_i32 = arith.constant 0 : i32
    %c0_i32_0 = arith.constant 0 : i32
    %c0_i32_1 = arith.constant 0 : i32
    return %c0_i32, %c0_i32_0 : i32, i32
  }
  func.func @transform_2(%arg0: i32) -> (i32, i32) {
    %c0_i32 = arith.constant 0 : i32
    %c0_i32_0 = arith.constant 0 : i32
    return %arg0, %c0_i32 : i32, i32
  }
}

</mosaic_0001>

<bundles_post_ra>
// kernel: tpu_custom_call.1
= control target key start
LH: loop header
LB: loop body
LE: loop exit
PB: predicated region body
PF: predicated region fallthrough
CT: control target
= control target key end

     0   :  { %v229_v1 = vmov 0   ;;  %vm116_vm0 = vcmask 523264   ;;  %s288_s0 = inlined_call_operand.vmem [shape: bf16[8,192], index: 0, kind: input, shape index: {}]   ;;  %s289_s1 = inlined_call_operand.vmem [shape: bf16[192,32], index: 1, kind: input, shape index: {}]   ;;  %s290_s2 = inlined_call_operand.hbm [shape: f32[8,32], index: 2, kind: output, shape index: {}]  }
   0x1   :  { %v193_v0 = vld [vmem:[%s289_s1 + $0x38] sm:$0xff]   ;;  %120 = vmatprep.subr.bf16.mxu0 %v229_v1  ;;  %v194_v2 = vld [vmem:[%s289_s1 + $0x30] sm:$0xff]   ;;  %v195_v3 = vld [vmem:[%s289_s1 + $0x28] sm:$0xff]  }
   0x2   :  { %121 = vmatpush1.bf16.msra.mxu0 %v193_v0  ;;  %v196_v4 = vld [vmem:[%s289_s1 + $0x20] sm:$0xff]  }
   0x3   :  { %122 = vmatprep.subr.bf16.mxu0 %v229_v1  ;;  %v13_v5 = vld [vmem:[%s288_s0] sm:$0xff] }
   0x6   :  { %123 = vmatpush1.bf16.msra.mxu0 %v194_v2 }
   0x7   :  { %124 = vmatprep.subr.bf16.mxu0 %v229_v1 }
   0xa   :  { %125 = vmatpush1.bf16.msra.mxu0 %v195_v3 }
   0xb   :  { %126 = vmatprep.subr.bf16.mxu0 %v229_v1 }
   0xc   :  { %7 = vsyncpa [#allocation3], 0  ;;  %v177_v6 = vcombine.high %v13_v5, %v13_v5  ;;  %v197_v7 = vld [vmem:[%s289_s1 + $0x18] sm:$0xff]   ;;  %v198_v8 = vld [vmem:[%s289_s1 + $0x10] sm:$0xff]   ;;  %v176_v15 = vcombine.low %v13_v5, %v13_v5  ;;  %s230_s6 = smov [#allocation2]   ;;  %vm160_vm1 = vcmask 261120  }
   0xd   :  { %v199_v9 = vld [vmem:[%s289_s1 + $0x8] sm:$0xff]   ;;  %v200_v10 = vld [vmem:[%s289_s1] sm:$0xff]   ;;  %v201_v11 = vld [vmem:[%s289_s1 + $0x58] sm:$0xff]   ;;  %s168_s7 = sshll.u32 %s230_s6, 4  ;;  %s169_s7 = int_to_ptr.vmem [resolvable:$true] %s168_s7 }
   0xe   :  { %127 = vmatpush1.bf16.msra.mxu0 %v196_v4  ;;  %190 = vmatprep.mubr.msk.bf16.mxu0 %vm116_vm0, %v177_v6  ;;  %v202_v12 = vld [vmem:[%s289_s1 + $0x50] sm:$0xff]   ;;  %v203_v13 = vld [vmem:[%s289_s1 + $0x48] sm:$0xff]   ;;  %v204_v14 = vld [vmem:[%s289_s1 + $0x40] sm:$0xff]   ;;  %s207_s8 = scalar_lea.vmem %s169_s7, 128  ;;  %p212_p1 = scmp.lt.s32.totalorder %s169_s7, %s169_s7 }
   0xf   :  { %128 = vmatprep.subr.bf16.mxu0 %v229_v1  ;;  %p208_p0 = scmp.ne.s32.totalorder %s169_s7, %s207_s8  ;;  %p213_p2 = scmp.lt.s32.totalorder %s207_s8, %s207_s8 }
  0x11   :  { %p214_p3 = por %p213_p2, %p212_p1 }
  0x12   :  { %129 = vmatpush1.bf16.msra.mxu0 %v197_v7 }
  0x13   :  { %130 = vmatprep.subr.bf16.mxu0 %v229_v1  ;;  %p215_p4 = pnand %p214_p3, %p208_p0 }
  0x16   :  { %131 = vmatpush1.bf16.msra.mxu0 %v198_v8 }
  0x17   :  { %132 = vmatprep.subr.bf16.mxu0 %v229_v1 }
  0x1a   :  { %133 = vmatpush1.bf16.msra.mxu0 %v199_v9 }
  0x1b   :  { %134 = vmatprep.subr.bf16.mxu0 %v229_v1 }
  0x1e   :  { %135 = vmatpush1.bf16.msra.mxu0 %v200_v10 }
  0x1f   :  { %144 = vmatprep.subr.bf16.mxu0 %v229_v1 }
  0x22   :  { %145 = vmatpush2.bf16.msra.mxu0 %v201_v11 }
  0x23   :  { %146 = vmatprep.subr.bf16.mxu0 %v229_v1 }
  0x26   :  { %147 = vmatpush2.bf16.msra.mxu0 %v202_v12 }
  0x27   :  { %148 = vmatprep.subr.bf16.mxu0 %v229_v1 }
  0x2a   :  { %149 = vmatpush2.bf16.msra.mxu0 %v203_v13 }
  0x2b   :  { %150 = vmatprep.subr.bf16.mxu0 %v229_v1 }
  0x2e   :  { %151 = vmatpush2.bf16.msra.mxu0 %v204_v14 }
  0x31   :  { %153 = vmatmul.mubr.bf16.vlgmr.msra.gmra.mxu0 %v176_v15 }
  0xf1   :  { %v154_v16 = vpop.f32.mrf.mxu0 }
  0xf2   :  { %161 = vst.msk [vmem:[#allocation2] sm:$0xff] %vm160_vm1, %v154_v16 }
  0xf3   :  { %v156_v17 = vpop.f32.mrf.mxu0 }
  0xf4   :  { %218 = shalt.err (!%p215_p4)
}
  0xf5   :  { %171 = dma.vmem_to_hbm [thread:$0]  %s169_s7, 128, %s290_s2, [#allocation3]   ;;  %v157_v18 = vpop.f32.mrf.mxu0 }
  0xf7   :  { %v158_v19 = vpop.f32.mrf.mxu0 }
  0xf8   :  { %227 = dma.done.wait [#allocation3], 128  }
  0xf9   :  { %228 = vsyncadd [#allocation3], 4294967168 }
  0xfa   :  { %175 = vsyncpa [#allocation3], 1 }

</bundles_post_ra>
